<compile_context>
chip_gen: v6e
topology: v6e:2x2x1
jax: 0.10.0
libtpu: 0.0.40
codegen_flags: <defaults>
</compile_context>

<pallas_src>
import jax
import jax.numpy as jnp
from jax.experimental import pallas as pl
from jax.experimental.pallas import tpu as pltpu


def _noop_kernel(x_ref, o_ref):
    # Identity: copy the current VMEM tile straight to the output tile.
    o_ref[...] = x_ref[...]


_LANE_CANDIDATES = (4096, 2048, 1024, 512, 256, 128)
_TARGET_BLOCK_BYTES = 2 * 1024 * 1024  # ~2 MiB/block; (in+out) x dbl-buf ~= 8 MiB VMEM


def noop(x: jax.Array) -> jax.Array:
    """Pallas implementation of NoOp.forward(x) -> x (identity, same shape/dtype)."""
    orig_shape = x.shape
    n = x.size

    if n == 0:
        # Nothing to copy; identity on an empty array is the array itself.
        return x

    itemsize = jnp.dtype(x.dtype).itemsize
    # Native sublane multiple per dtype: f32 -> 8, bf16 -> 16, int8/fp8 -> 32.
    sub = max(8, 32 // max(1, itemsize))

    # Find a lane-dense 2D factorization (rows, lanes) that needs NO padding.
    lanes = None
    for cand in _LANE_CANDIDATES:
        if n % cand == 0:
            lanes = cand
            break

    if lanes is None:
        # Ragged / tiny case: single whole-array block (full dims satisfy the
        # tiling constraint), no grid, no padding, no extra HBM passes.
        x_in = jnp.reshape(x, (1, 1)) if x.ndim == 0 else x
        out = pl.pallas_call(
            _noop_kernel,
            out_shape=jax.ShapeDtypeStruct(x_in.shape, x_in.dtype),
            input_output_aliases={0: 0},
        )(x_in)
        return jnp.reshape(out, orig_shape)

    rows = n // lanes
    x2d = jnp.reshape(x, (rows, lanes))  # contiguous reshape: free, no pad

    # ~2 MiB blocks, rows rounded to the dtype's sublane multiple. A partial
    # last block along rows is handled (masked) by Pallas.
    block_rows = max(sub, (_TARGET_BLOCK_BYTES // (lanes * itemsize)) // sub * sub)
    block_rows = min(block_rows, rows)
    grid = (pl.cdiv(rows, block_rows),)

    out2d = pl.pallas_call(
        _noop_kernel,
        out_shape=jax.ShapeDtypeStruct((rows, lanes), x.dtype),
        grid=grid,
        in_specs=[pl.BlockSpec((block_rows, lanes), lambda i: (i, 0))],
        out_specs=pl.BlockSpec((block_rows, lanes), lambda i: (i, 0)),
        input_output_aliases={0: 0},
        compiler_params=pltpu.CompilerParams(
            dimension_semantics=("parallel",),
        ),
    )(x2d)

    return jnp.reshape(out2d, orig_shape)


if __name__ == "__main__":
    key = jax.random.PRNGKey(0)

    # Small NCHW input consistent with typical usage of NoOp in a conv stack.
    x = jax.random.normal(key, (2, 4, 16, 16), dtype=jnp.float32)
    y = jax.block_until_ready(noop(x))
    assert y.shape == x.shape, (y.shape, x.shape)
    assert y.dtype == x.dtype, (y.dtype, x.dtype)
    assert bool(jnp.all(y == x)), "NoOp output differs from input"

    # Ragged size exercising the whole-array fallback path (no padding used).
    x2 = jax.random.normal(jax.random.PRNGKey(1), (7, 300), dtype=jnp.float32)
    y2 = jax.block_until_ready(noop(x2))
    assert y2.shape == x2.shape and y2.dtype == x2.dtype
    assert bool(jnp.all(y2 == x2)), "NoOp (ragged path) output differs from input"

    # bf16 path (different sublane multiple), lane-dense factorization.
    x3 = jax.random.normal(jax.random.PRNGKey(2), (4, 8, 32), dtype=jnp.bfloat16)
    y3 = jax.block_until_ready(noop(x3))
    assert y3.shape == x3.shape and y3.dtype == x3.dtype
    assert bool(jnp.all(y3 == x3)), "NoOp (bf16 path) output differs from input"

    print("KERNEL_OK")
</pallas_src>

<mosaic_0001>
module attributes {stable_mosaic.version = 11 : i64} {
  func.func @_noop_kernel(%arg0: i32, %arg1: memref<1x2048xf32, #tpu.memory_space<vmem>>, %arg2: memref<1x2048xf32, #tpu.memory_space<vmem>>) attributes {dimension_semantics = [#tpu.dimension_semantics<parallel>], iteration_bounds = array<i64: 1>, scalar_prefetch = 0 : i64, scratch_operands = 0 : i64, tpu.core_type = #tpu.core_type<tc>, window_params = [{transform_indices = @transform_0, window_bounds = array<i64: 1, 2048>}, {transform_indices = @transform_1, window_bounds = array<i64: 1, 2048>}]} {
    %c0 = arith.constant 0 : index
    %c0_0 = arith.constant 0 : index
    %0 = vector.load %arg1[%c0, %c0_0] : memref<1x2048xf32, #tpu.memory_space<vmem>>, vector<1x2048xf32>
    %c0_1 = arith.constant 0 : index
    %c0_2 = arith.constant 0 : index
    %1 = vector.load %arg2[%c0_1, %c0_2] : memref<1x2048xf32, #tpu.memory_space<vmem>>, vector<1x2048xf32>
    tpu.vector_store %arg2[%c0_1, %c0_2], %0 {strides = array<i32>} : memref<1x2048xf32, #tpu.memory_space<vmem>>, vector<1x2048xf32>,
    return
  }
  func.func @transform_0(%arg0: i32) -> (i32, i32) {
    %c0_i32 = arith.constant 0 : i32
    %c0_i32_0 = arith.constant 0 : i32
    return %arg0, %c0_i32 : i32, i32
  }
  func.func @transform_1(%arg0: i32) -> (i32, i32) {
    %c0_i32 = arith.constant 0 : i32
    %c0_i32_0 = arith.constant 0 : i32
    return %arg0, %c0_i32 : i32, i32
  }
}

</mosaic_0001>

<bundles_post_ra>
// kernel: tpu_custom_call.1
= control target key start
LH: loop header
LB: loop body
LE: loop exit
PB: predicated region body
PF: predicated region fallthrough
CT: control target
= control target key end

     0   :  { %6 = vsyncpa [#allocation3], 0  ;;  %s104_s0 = inlined_call_operand.hbm [shape: f32[1,2048], index: 0, kind: input, shape index: {}, may-alias: {0,1}]   ;;  %s105_s1 = inlined_call_operand.hbm [shape: f32[1,2048], index: 1, kind: output, shape index: {}, may-alias: {0,1}]  }
   0x1   :  { %7 = vsyncpa [#allocation4], 0  ;;  %s86_s6 = smov [#allocation2]  }
   0x2   :  { %s14_s7 = sshll.u32 %s86_s6, 4  ;;  %s15_s7 = int_to_ptr.vmem [resolvable:$true] %s14_s7 }
   0x3   :  { %s50_s8 = scalar_lea.vmem %s15_s7, 256  ;;  %p55_p1 = scmp.lt.s32.totalorder %s15_s7, %s15_s7 }
   0x4   :  { %p51_p0 = scmp.ne.s32.totalorder %s15_s7, %s50_s8  ;;  %p56_p2 = scmp.lt.s32.totalorder %s50_s8, %s50_s8 }
   0x6   :  { %p57_p3 = por %p56_p2, %p55_p1 }
   0x8   :  { %p58_p4 = pnand %p57_p3, %p51_p0 }
   0xa   :  { %61 = shalt.err (!%p58_p4)
}
   0xb   :  { %17 = dma.hbm_to_vmem [thread:$0]  %s104_s0, 256, %s15_s7, [#allocation3]  }
   0xc   :  { %82 = dma.done.wait [#allocation3], 256  }
   0xd   :  { %83 = vsyncadd [#allocation3], 4294967040  ;;  %s87_s11 = smov [#allocation5]   ;;  %v21_v0 = vld [vmem:[#allocation2] sm:$0xff]  ;;  %v22_v1 = vld [vmem:[#allocation2 + $0x8] sm:$0xff] }
   0xe   :  { %s31_s12 = sshll.u32 %s87_s11, 4  ;;  %23 = vst [vmem:[#allocation5] sm:$0xff] %v21_v0  ;;  %24 = vst [vmem:[#allocation5 + $0x8] sm:$0xff] %v22_v1  ;;  %s32_s12 = int_to_ptr.vmem [resolvable:$true] %s31_s12 }
   0xf   :  { %s62_s13 = scalar_lea.vmem %s32_s12, 256  ;;  %p67_p6 = scmp.lt.s32.totalorder %s32_s12, %s32_s12 }
  0x10   :  { %p63_p5 = scmp.ne.s32.totalorder %s32_s12, %s62_s13  ;;  %p68_p7 = scmp.lt.s32.totalorder %s62_s13, %s62_s13 }
  0x12   :  { %p69_p8 = por %p68_p7, %p67_p6 }
  0x14   :  { %p70_p9 = pnand %p69_p8, %p63_p5 }
  0x16   :  { %73 = shalt.err (!%p70_p9)
}
  0x17   :  { %34 = dma.vmem_to_hbm [thread:$0]  %s32_s12, 256, %s105_s1, [#allocation4]  }
  0x18   :  { %84 = dma.done.wait [#allocation4], 256  }
  0x19   :  { %85 = vsyncadd [#allocation4], 4294967040 }
  0x1a   :  { %38 = vsyncpa [#allocation3], 1 }
  0x1b   :  { %39 = vsyncpa [#allocation4], 1 }

</bundles_post_ra>
